<compile_context>
chip_gen: v6e
topology: v6e:2x2x1
jax: 0.10.0
libtpu: 0.0.40
codegen_flags: <defaults>
</compile_context>

<pallas_src>
import functools

import jax
import jax.numpy as jnp
from jax.experimental import pallas as pl
from jax.experimental.pallas import tpu as pltpu


# --------------------------------------------------------------------------
# Kernel
# --------------------------------------------------------------------------
def _mlp_logsoftmax_kernel(x_ref, w1_ref, b1_ref, w2_ref, b2_ref,
                           w3_ref, b3_ref, o_ref, *, num_classes):
    # x tile arrives already in bf16 (streamed); all matmuls accumulate in f32.
    x = x_ref[...]

    # Layer 1: Linear + ReLU
    h1 = jnp.dot(x, w1_ref[...], preferred_element_type=jnp.float32) + b1_ref[...]
    h1 = jnp.maximum(h1, 0.0)

    # Layer 2: Linear + ReLU
    h2 = jnp.dot(h1.astype(jnp.bfloat16), w2_ref[...],
                 preferred_element_type=jnp.float32) + b2_ref[...]
    h2 = jnp.maximum(h2, 0.0)

    # Output layer: Linear
    logits = jnp.dot(h2.astype(jnp.bfloat16), w3_ref[...],
                     preferred_element_type=jnp.float32) + b3_ref[...]

    # Mask padded class columns (compile-time constant mask) so the reduction
    # and the store stay full-lane-width while log-probs of real classes match
    # the unpadded computation exactly.
    if logits.shape[1] != num_classes:
        col = jax.lax.broadcasted_iota(jnp.int32, logits.shape, 1)
        logits = jnp.where(col < num_classes, logits, jnp.float32(-1e30))

    # Numerically stable log_softmax along the class axis.
    m = jnp.max(logits, axis=1, keepdims=True)
    shifted = logits - m
    lse = jnp.log(jnp.sum(jnp.exp(shifted), axis=1, keepdims=True))
    o_ref[...] = (shifted - lse).astype(o_ref.dtype)


# --------------------------------------------------------------------------
# Helpers
# --------------------------------------------------------------------------
def _round_up(n, m):
    return ((n + m - 1) // m) * m


def _pad2(a, rows, cols):
    return jnp.pad(a, ((0, rows - a.shape[0]), (0, cols - a.shape[1])))


def _round_dim(n):
    """Lane-pad a feature dim: prefer 256 alignment (v6e/v7x 256x256 MXU) when
    the extra padding costs <= ~12.5%, else 128."""
    n128 = _round_up(n, 128)
    n256 = _round_up(n, 256)
    return n256 if (n256 - n) * 8 <= n else n128


def _usable_vmem_bytes():
    """~3/4 of physical VMEM (leaves room for Mosaic internal scratch).
    v7x: 64 MiB -> 48 MiB; v5e/v6e: 128 MiB -> 96 MiB."""
    try:
        cap = int(pltpu.get_tpu_info().vmem_capacity_bytes)
    except Exception:
        cap = 64 * 1024 * 1024  # conservative default (v7x per-TensorCore VMEM)
    return (cap * 3) // 4


def _choose_tile_b(batch, max_tile):
    """Batch tile: sublane-aligned, <= max_tile, <= ~12.5% padding waste, and
    >= 2 grid steps when cheap (so the 'parallel' axis feeds both v7x cores)."""
    granule = 16  # covers bf16 sublane packing of the streamed x tile
    b_min = _round_up(batch, granule)
    tile = granule
    for t in (512, 256, 128, 64, 32, 16):
        if t > max_tile or t > b_min:
            continue
        waste = _round_up(batch, t) - b_min
        if waste * 8 <= b_min:
            tile = t
            break
    if batch >= 2 * granule and _round_up(batch, tile) // tile < 2:
        tile = max(granule, tile // 2)
    return tile


# --------------------------------------------------------------------------
# Parameter preparation (hoisted out of the per-call path)
# --------------------------------------------------------------------------
def prepare_params(w1, b1, w2, b2, w3, b3):
    """Pad to lane-aligned shapes and cast weights to bf16 ONCE.
    Weights: (in, out); biases: (1, out)."""
    E, H = w1.shape
    O = w3.shape[1]
    Ep, Hp, Op = _round_dim(E), _round_dim(H), _round_up(O, 128)
    return {
        "w1": _pad2(jnp.asarray(w1, jnp.float32), Ep, Hp).astype(jnp.bfloat16),
        "b1": _pad2(jnp.asarray(b1, jnp.float32), 1, Hp),
        "w2": _pad2(jnp.asarray(w2, jnp.float32), Hp, Hp).astype(jnp.bfloat16),
        "b2": _pad2(jnp.asarray(b2, jnp.float32), 1, Hp),
        "w3": _pad2(jnp.asarray(w3, jnp.float32), Hp, Op).astype(jnp.bfloat16),
        "b3": _pad2(jnp.asarray(b3, jnp.float32), 1, Op),
        "dims": (E, H, O),
    }


# --------------------------------------------------------------------------
# Forward wrapper
# --------------------------------------------------------------------------
def feed_forward_classifier_forward(x, params):
    """x: (B, E) float/bfloat16. params: output of prepare_params().
    Returns (B, O) log-probs in float32."""
    E, H, O = params["dims"]
    w1p, b1p = params["w1"], params["b1"]
    w2p, b2p = params["w2"], params["b2"]
    w3p, b3p = params["w3"], params["b3"]
    Ep, Hp = w1p.shape
    Op = w3p.shape[1]
    B = x.shape[0]

    usable_vmem = _usable_vmem_bytes()

    # Resident footprint (conservatively assume double-buffered weights so the
    # non-Buffered fallback also fits) + per-tile activation/IO footprint.
    w_bytes = (Ep * Hp + Hp * Hp + Hp * Op) * 2          # bf16 weights
    bias_bytes = (2 * Hp + Op) * 4 * 8                   # f32 biases, sublane-padded
    resident = 2 * (w_bytes + bias_bytes)

    def _tile_bytes(t):
        # 2x-buffered bf16 x tile + 2x-buffered f32 out tile + live f32 intermediates
        return 2 * t * Ep * 2 + 2 * t * Op * 4 + 4 * t * Hp * 4

    if resident + _tile_bytes(16) > usable_vmem:
        # TODO(synk): hidden-dim-tiled fallback (K-split grid axis + f32 VMEM
        # accumulator, init/finalize via pl.when) for weights too large to keep
        # VMEM-resident (large E/H on v7x's 64 MiB VMEM).
        raise NotImplementedError("weights too large to keep VMEM-resident on this TPU")

    max_tile = 16
    for t in (512, 256, 128, 64, 32, 16):
        if resident + _tile_bytes(t) <= usable_vmem:
            max_tile = t
            break

    tile_b = _choose_tile_b(B, max_tile)
    Bp = _round_up(B, tile_b)

    # Stream x in bf16 (halves the only steady-state input DMA); zero padding is
    # semantics-preserving through Linear+ReLU.
    xp = _pad2(x.astype(jnp.bfloat16), Bp, Ep)

    needed = resident + _tile_bytes(tile_b)
    vmem_budget = int(min(max(needed * 5 // 4, 32 * 1024 * 1024), usable_vmem))

    grid = (Bp // tile_b,)
    kernel = functools.partial(_mlp_logsoftmax_kernel, num_classes=O)

    def _run(single_buffer_weights):
        def const_spec(shape):
            # Constant-index (VMEM-resident) blocks: request a single buffer so
            # they aren't double-buffered (halves resident-weight VMEM).
            if single_buffer_weights:
                return pl.BlockSpec(shape, lambda i: (0, 0),
                                    pipeline_mode=pl.Buffered(1))
            return pl.BlockSpec(shape, lambda i: (0, 0))

        in_specs = [
            pl.BlockSpec((tile_b, Ep), lambda i: (i, 0)),   # x tile (pipelined, bf16)
            const_spec((Ep, Hp)),                           # W1 (resident)
            const_spec((1, Hp)),                            # b1
            const_spec((Hp, Hp)),                           # W2
            const_spec((1, Hp)),                            # b2
            const_spec((Hp, Op)),                           # W3
            const_spec((1, Op)),                            # b3
        ]
        return pl.pallas_call(
            kernel,
            # Output kept f32 (downstream NLL-loss friendly); bf16 is an option
            # to further cut writeback if tolerated.
            out_shape=jax.ShapeDtypeStruct((Bp, Op), jnp.float32),
            grid_spec=pltpu.PrefetchScalarGridSpec(
                num_scalar_prefetch=0,
                grid=grid,
                in_specs=in_specs,
                out_specs=pl.BlockSpec((tile_b, Op), lambda i: (i, 0)),
            ),
            compiler_params=pltpu.CompilerParams(
                dimension_semantics=("parallel",),
                vmem_limit_bytes=vmem_budget,
            ),
        )(xp, w1p, b1p, w2p, b2p, w3p, b3p)

    use_single = hasattr(pl, "Buffered")
    try:
        out_padded = _run(use_single)
    except Exception:
        if not use_single:
            raise
        # Older/variant Pallas build without pipeline_mode/Buffered(1) support:
        # fall back to default double-buffered resident weights.
        out_padded = _run(False)

    return out_padded[:B, :O]


# --------------------------------------------------------------------------
# Params + reference
# --------------------------------------------------------------------------
def init_params(key, embedding_dim, hidden_dim, output_dim):
    """Deterministic synthetic init (PyTorch-Linear-like uniform fan-in scaling)."""
    ks = jax.random.split(key, 6)

    def lin(kw, kb, fan_in, fan_out):
        bound = 1.0 / jnp.sqrt(fan_in)
        w = jax.random.uniform(kw, (fan_in, fan_out), jnp.float32, -bound, bound)
        b = jax.random.uniform(kb, (1, fan_out), jnp.float32, -bound, bound)
        return w, b

    w1, b1 = lin(ks[0], ks[1], embedding_dim, hidden_dim)
    w2, b2 = lin(ks[2], ks[3], hidden_dim, hidden_dim)
    w3, b3 = lin(ks[4], ks[5], hidden_dim, output_dim)
    return w1, b1, w2, b2, w3, b3


def reference_forward(x, w1, b1, w2, b2, w3, b3):
    """Pure-JAX reference, mimicking the kernel's bf16-input / f32-accumulate matmuls."""
    def mm(a, w):
        a16 = a.astype(jnp.bfloat16).astype(jnp.float32)
        w16 = w.astype(jnp.bfloat16).astype(jnp.float32)
        return a16 @ w16

    h1 = jnp.maximum(mm(x, w1) + b1, 0.0)
    h2 = jnp.maximum(mm(h1, w2) + b2, 0.0)
    logits = mm(h2, w3) + b3
    return jax.nn.log_softmax(logits, axis=1)


# TODO(synk): train/batch/test/classify/predict are host-side training/eval loops
# (SGD, NLLLoss, numpy plumbing) with no Pallas equivalent; only forward() is a kernel.

if __name__ == "__main__":
    key = jax.random.PRNGKey(0)
    k_x, k_p = jax.random.split(key)

    batch = 8
    embedding_dim = 32
    hidden_dim = 32
    output_dim = 8

    x = jax.random.normal(k_x, (batch, embedding_dim), jnp.float32)
    raw_params = init_params(k_p, embedding_dim, hidden_dim, output_dim)

    # Pad + bf16-cast weights ONCE (hoisted out of the per-call path).
    params = prepare_params(*raw_params)

    out = feed_forward_classifier_forward(x, params)
    out = jax.block_until_ready(out)

    ref = reference_forward(x, *raw_params)
    assert out.shape == (batch, output_dim)
    assert bool(jnp.isfinite(out).all()), "non-finite values in kernel output"
    assert jnp.allclose(out, ref, atol=2e-4, rtol=2e-4), "mismatch vs JAX reference"

    print("KERNEL_OK")
</pallas_src>

<mosaic_0001>
module attributes {stable_mosaic.version = 11 : i64} {
  func.func @_mlp_logsoftmax_kernel(%arg0: i32, %arg1: memref<16x128xbf16, #tpu.memory_space<vmem>>, %arg2: memref<128x128xbf16, #tpu.memory_space<vmem>>, %arg3: memref<1x128xf32, #tpu.memory_space<vmem>>, %arg4: memref<128x128xbf16, #tpu.memory_space<vmem>>, %arg5: memref<1x128xf32, #tpu.memory_space<vmem>>, %arg6: memref<128x128xbf16, #tpu.memory_space<vmem>>, %arg7: memref<1x128xf32, #tpu.memory_space<vmem>>, %arg8: memref<16x128xf32, #tpu.memory_space<vmem>>) attributes {dimension_semantics = [#tpu.dimension_semantics<parallel>], iteration_bounds = array<i64: 1>, scalar_prefetch = 0 : i64, scratch_operands = 0 : i64, tpu.core_type = #tpu.core_type<tc>, window_params = [{transform_indices = @transform_0, window_bounds = array<i64: 16, 128>}, {pipeline_mode = #tpu.pipeline_mode<synchronous>, transform_indices = @transform_1, window_bounds = array<i64: 128, 128>}, {pipeline_mode = #tpu.pipeline_mode<synchronous>, transform_indices = @transform_2, window_bounds = array<i64: 1, 128>}, {pipeline_mode = #tpu.pipeline_mode<synchronous>, transform_indices = @transform_3, window_bounds = array<i64: 128, 128>}, {pipeline_mode = #tpu.pipeline_mode<synchronous>, transform_indices = @transform_4, window_bounds = array<i64: 1, 128>}, {pipeline_mode = #tpu.pipeline_mode<synchronous>, transform_indices = @transform_5, window_bounds = array<i64: 128, 128>}, {pipeline_mode = #tpu.pipeline_mode<synchronous>, transform_indices = @transform_6, window_bounds = array<i64: 1, 128>}, {transform_indices = @transform_7, window_bounds = array<i64: 16, 128>}]} {
    %c0 = arith.constant 0 : index
    %c0_0 = arith.constant 0 : index
    %0 = vector.load %arg1[%c0, %c0_0] : memref<16x128xbf16, #tpu.memory_space<vmem>>, vector<16x128xbf16>
    %c0_1 = arith.constant 0 : index
    %c0_2 = arith.constant 0 : index
    %1 = vector.load %arg2[%c0_1, %c0_2] : memref<128x128xbf16, #tpu.memory_space<vmem>>, vector<128x128xbf16>
    %cst = arith.constant dense<0.000000e+00> : vector<16x128xf32>
    %2 = tpu.matmul %0, %1, %cst {dimension_numbers = #tpu.dot_dimension_numbers<[1], [0], [0], [1], [0, 0, 1, 1], [], []>} : vector<16x128xbf16>, vector<128x128xbf16>, vector<16x128xf32> -> vector<16x128xf32>
    %c0_3 = arith.constant 0 : index
    %c0_4 = arith.constant 0 : index
    %3 = vector.load %arg3[%c0_3, %c0_4] : memref<1x128xf32, #tpu.memory_space<vmem>>, vector<1x128xf32>
    %4 = vector.broadcast %3 : vector<1x128xf32> to vector<16x128xf32>
    %5 = arith.addf %2, %4 : vector<16x128xf32>
    %cst_5 = arith.constant 0.000000e+00 : f32
    %6 = vector.broadcast %cst_5 : f32 to vector<16x128xf32>
    %7 = arith.maximumf %5, %6 : vector<16x128xf32>
    %8 = arith.truncf %7 : vector<16x128xf32> to vector<16x128xbf16>
    %c0_6 = arith.constant 0 : index
    %c0_7 = arith.constant 0 : index
    %9 = vector.load %arg4[%c0_6, %c0_7] : memref<128x128xbf16, #tpu.memory_space<vmem>>, vector<128x128xbf16>
    %cst_8 = arith.constant dense<0.000000e+00> : vector<16x128xf32>
    %10 = tpu.matmul %8, %9, %cst_8 {dimension_numbers = #tpu.dot_dimension_numbers<[1], [0], [0], [1], [0, 0, 1, 1], [], []>} : vector<16x128xbf16>, vector<128x128xbf16>, vector<16x128xf32> -> vector<16x128xf32>
    %c0_9 = arith.constant 0 : index
    %c0_10 = arith.constant 0 : index
    %11 = vector.load %arg5[%c0_9, %c0_10] : memref<1x128xf32, #tpu.memory_space<vmem>>, vector<1x128xf32>
    %12 = vector.broadcast %11 : vector<1x128xf32> to vector<16x128xf32>
    %13 = arith.addf %10, %12 : vector<16x128xf32>
    %cst_11 = arith.constant 0.000000e+00 : f32
    %14 = vector.broadcast %cst_11 : f32 to vector<16x128xf32>
    %15 = arith.maximumf %13, %14 : vector<16x128xf32>
    %16 = arith.truncf %15 : vector<16x128xf32> to vector<16x128xbf16>
    %c0_12 = arith.constant 0 : index
    %c0_13 = arith.constant 0 : index
    %17 = vector.load %arg6[%c0_12, %c0_13] : memref<128x128xbf16, #tpu.memory_space<vmem>>, vector<128x128xbf16>
    %cst_14 = arith.constant dense<0.000000e+00> : vector<16x128xf32>
    %18 = tpu.matmul %16, %17, %cst_14 {dimension_numbers = #tpu.dot_dimension_numbers<[1], [0], [0], [1], [0, 0, 1, 1], [], []>} : vector<16x128xbf16>, vector<128x128xbf16>, vector<16x128xf32> -> vector<16x128xf32>
    %c0_15 = arith.constant 0 : index
    %c0_16 = arith.constant 0 : index
    %19 = vector.load %arg7[%c0_15, %c0_16] : memref<1x128xf32, #tpu.memory_space<vmem>>, vector<1x128xf32>
    %20 = vector.broadcast %19 : vector<1x128xf32> to vector<16x128xf32>
    %21 = arith.addf %18, %20 : vector<16x128xf32>
    %22 = tpu.iota {dimensions = array<i32: 1>} : vector<16x128xi32>
    %c8_i32 = arith.constant 8 : i32
    %23 = vector.broadcast %c8_i32 : i32 to vector<16x128xi32>
    %24 = arith.cmpi slt, %22, %23 : vector<16x128xi32>
    %cst_17 = arith.constant -1.000000e+30 : f32
    %25 = vector.broadcast %cst_17 : f32 to vector<16x128xf32>
    %26 = arith.select %24, %21, %25 : vector<16x128xi1>, vector<16x128xf32>
    %cst_18 = arith.constant dense<0xFF800000> : vector<16xf32>
    %27 = vector.multi_reduction <maximumf>, %26, %cst_18 [1] : vector<16x128xf32> to vector<16xf32>
    %28 = vector.shape_cast %27 : vector<16xf32> to vector<16x1xf32>
    %29 = vector.broadcast %28 : vector<16x1xf32> to vector<16x128xf32>
    %30 = arith.subf %26, %29 : vector<16x128xf32>
    %31 = math.exp %30 : vector<16x128xf32>
    %cst_19 = arith.constant dense<0.000000e+00> : vector<16xf32>
    %32 = vector.multi_reduction <add>, %31, %cst_19 [1] : vector<16x128xf32> to vector<16xf32>
    %33 = vector.shape_cast %32 : vector<16xf32> to vector<16x1xf32>
    %34 = math.log %33 : vector<16x1xf32>
    %35 = vector.broadcast %34 : vector<16x1xf32> to vector<16x128xf32>
    %36 = arith.subf %30, %35 : vector<16x128xf32>
    %c0_20 = arith.constant 0 : index
    %c0_21 = arith.constant 0 : index
    %37 = vector.load %arg8[%c0_20, %c0_21] : memref<16x128xf32, #tpu.memory_space<vmem>>, vector<16x128xf32>
    tpu.vector_store %arg8[%c0_20, %c0_21], %36 {strides = array<i32>} : memref<16x128xf32, #tpu.memory_space<vmem>>, vector<16x128xf32>,
    return
  }
  func.func @transform_0(%arg0: i32) -> (i32, i32) {
    %c0_i32 = arith.constant 0 : i32
    %c0_i32_0 = arith.constant 0 : i32
    return %arg0, %c0_i32 : i32, i32
  }
  func.func @transform_1(%arg0: i32) -> (i32, i32) {
    %c0_i32 = arith.constant 0 : i32
    %c0_i32_0 = arith.constant 0 : i32
    %c0_i32_1 = arith.constant 0 : i32
    return %c0_i32, %c0_i32_0 : i32, i32
  }
  func.func @transform_2(%arg0: i32) -> (i32, i32) {
    %c0_i32 = arith.constant 0 : i32
    %c0_i32_0 = arith.constant 0 : i32
    %c0_i32_1 = arith.constant 0 : i32
    return %c0_i32, %c0_i32_0 : i32, i32
  }
  func.func @transform_3(%arg0: i32) -> (i32, i32) {
    %c0_i32 = arith.constant 0 : i32
    %c0_i32_0 = arith.constant 0 : i32
    %c0_i32_1 = arith.constant 0 : i32
    return %c0_i32, %c0_i32_0 : i32, i32
  }
  func.func @transform_4(%arg0: i32) -> (i32, i32) {
    %c0_i32 = arith.constant 0 : i32
    %c0_i32_0 = arith.constant 0 : i32
    %c0_i32_1 = arith.constant 0 : i32
    return %c0_i32, %c0_i32_0 : i32, i32
  }
  func.func @transform_5(%arg0: i32) -> (i32, i32) {
    %c0_i32 = arith.constant 0 : i32
    %c0_i32_0 = arith.constant 0 : i32
    %c0_i32_1 = arith.constant 0 : i32
    return %c0_i32, %c0_i32_0 : i32, i32
  }
  func.func @transform_6(%arg0: i32) -> (i32, i32) {
    %c0_i32 = arith.constant 0 : i32
    %c0_i32_0 = arith.constant 0 : i32
    %c0_i32_1 = arith.constant 0 : i32
    return %c0_i32, %c0_i32_0 : i32, i32
  }
  func.func @transform_7(%arg0: i32) -> (i32, i32) {
    %c0_i32 = arith.constant 0 : i32
    %c0_i32_0 = arith.constant 0 : i32
    return %arg0, %c0_i32 : i32, i32
  }
}

module attributes {stable_mosaic.version = 11 : i64} {
  func.func @_mlp_logsoftmax_kernel(%arg0: i32, %arg1: memref<16x128xbf16, #tpu.memory_space<vmem>>, %arg2: memref<128x128xbf16, #tpu.memory_space<vmem>>, %arg3: memref<1x128xf32, #tpu.memory_space<vmem>>, %arg4: memref<128x128xbf16, #tpu.memory_space<vmem>>, %arg5: memref<1x128xf32, #tpu.memory_space<vmem>>, %arg6: memref<128x128xbf16, #tpu.memory_space<vmem>>, %arg7: memref<1x128xf32, #tpu.memory_space<vmem>>, %arg8: memref<16x128xf32, #tpu.memory_space<vmem>>) attributes {dimension_semantics = [#tpu.dimension_semantics<parallel>], iteration_bounds = array<i64: 1>, scalar_prefetch = 0 : i64, scratch_operands = 0 : i64, tpu.core_type = #tpu.core_type<tc>, window_params = [{transform_indices = @transform_0, window_bounds = array<i64: 16, 128>}, {pipeline_mode = #tpu.pipeline_mode<synchronous>, transform_indices = @transform_1, window_bounds = array<i64: 128, 128>}, {pipeline_mode = #tpu.pipeline_mode<synchronous>, transform_indices = @transform_2, window_bounds = array<i64: 1, 128>}, {pipeline_mode = #tpu.pipeline_mode<synchronous>, transform_indices = @transform_3, window_bounds = array<i64: 128, 128>}, {pipeline_mode = #tpu.pipeline_mode<synchronous>, transform_indices = @transform_4, window_bounds = array<i64: 1, 128>}, {pipeline_mode = #tpu.pipeline_mode<synchronous>, transform_indices = @transform_5, window_bounds = array<i64: 128, 128>}, {pipeline_mode = #tpu.pipeline_mode<synchronous>, transform_indices = @transform_6, window_bounds = array<i64: 1, 128>}, {transform_indices = @transform_7, window_bounds = array<i64: 16, 128>}]} {
    %c0 = arith.constant 0 : index
    %c0_0 = arith.constant 0 : index
    %0 = vector.load %arg1[%c0, %c0_0] : memref<16x128xbf16, #tpu.memory_space<vmem>>, vector<16x128xbf16>
    %c0_1 = arith.constant 0 : index
    %c0_2 = arith.constant 0 : index
    %1 = vector.load %arg2[%c0_1, %c0_2] : memref<128x128xbf16, #tpu.memory_space<vmem>>, vector<128x128xbf16>
    %cst = arith.constant dense<0.000000e+00> : vector<16x128xf32>
    %2 = tpu.matmul %0, %1, %cst {dimension_numbers = #tpu.dot_dimension_numbers<[1], [0], [0], [1], [0, 0, 1, 1], [], []>} : vector<16x128xbf16>, vector<128x128xbf16>, vector<16x128xf32> -> vector<16x128xf32>
    %c0_3 = arith.constant 0 : index
    %c0_4 = arith.constant 0 : index
    %3 = vector.load %arg3[%c0_3, %c0_4] : memref<1x128xf32, #tpu.memory_space<vmem>>, vector<1x128xf32>
    %4 = vector.broadcast %3 : vector<1x128xf32> to vector<16x128xf32>
    %5 = arith.addf %2, %4 : vector<16x128xf32>
    %cst_5 = arith.constant 0.000000e+00 : f32
    %6 = vector.broadcast %cst_5 : f32 to vector<16x128xf32>
    %7 = arith.maximumf %5, %6 : vector<16x128xf32>
    %8 = arith.truncf %7 : vector<16x128xf32> to vector<16x128xbf16>
    %c0_6 = arith.constant 0 : index
    %c0_7 = arith.constant 0 : index
    %9 = vector.load %arg4[%c0_6, %c0_7] : memref<128x128xbf16, #tpu.memory_space<vmem>>, vector<128x128xbf16>
    %cst_8 = arith.constant dense<0.000000e+00> : vector<16x128xf32>
    %10 = tpu.matmul %8, %9, %cst_8 {dimension_numbers = #tpu.dot_dimension_numbers<[1], [0], [0], [1], [0, 0, 1, 1], [], []>} : vector<16x128xbf16>, vector<128x128xbf16>, vector<16x128xf32> -> vector<16x128xf32>
    %c0_9 = arith.constant 0 : index
    %c0_10 = arith.constant 0 : index
    %11 = vector.load %arg5[%c0_9, %c0_10] : memref<1x128xf32, #tpu.memory_space<vmem>>, vector<1x128xf32>
    %12 = vector.broadcast %11 : vector<1x128xf32> to vector<16x128xf32>
    %13 = arith.addf %10, %12 : vector<16x128xf32>
    %cst_11 = arith.constant 0.000000e+00 : f32
    %14 = vector.broadcast %cst_11 : f32 to vector<16x128xf32>
    %15 = arith.maximumf %13, %14 : vector<16x128xf32>
    %16 = arith.truncf %15 : vector<16x128xf32> to vector<16x128xbf16>
    %c0_12 = arith.constant 0 : index
    %c0_13 = arith.constant 0 : index
    %17 = vector.load %arg6[%c0_12, %c0_13] : memref<128x128xbf16, #tpu.memory_space<vmem>>, vector<128x128xbf16>
    %cst_14 = arith.constant dense<0.000000e+00> : vector<16x128xf32>
    %18 = tpu.matmul %16, %17, %cst_14 {dimension_numbers = #tpu.dot_dimension_numbers<[1], [0], [0], [1], [0, 0, 1, 1], [], []>} : vector<16x128xbf16>, vector<128x128xbf16>, vector<16x128xf32> -> vector<16x128xf32>
    %c0_15 = arith.constant 0 : index
    %c0_16 = arith.constant 0 : index
    %19 = vector.load %arg7[%c0_15, %c0_16] : memref<1x128xf32, #tpu.memory_space<vmem>>, vector<1x128xf32>
    %20 = vector.broadcast %19 : vector<1x128xf32> to vector<16x128xf32>
    %21 = arith.addf %18, %20 : vector<16x128xf32>
    %22 = tpu.iota {dimensions = array<i32: 1>} : vector<16x128xi32>
    %c8_i32 = arith.constant 8 : i32
    %23 = vector.broadcast %c8_i32 : i32 to vector<16x128xi32>
    %24 = arith.cmpi slt, %22, %23 : vector<16x128xi32>
    %cst_17 = arith.constant -1.000000e+30 : f32
    %25 = vector.broadcast %cst_17 : f32 to vector<16x128xf32>
    %26 = arith.select %24, %21, %25 : vector<16x128xi1>, vector<16x128xf32>
    %cst_18 = arith.constant dense<0xFF800000> : vector<16xf32>
    %27 = vector.multi_reduction <maximumf>, %26, %cst_18 [1] : vector<16x128xf32> to vector<16xf32>
    %28 = vector.shape_cast %27 : vector<16xf32> to vector<16x1xf32>
    %29 = vector.broadcast %28 : vector<16x1xf32> to vector<16x128xf32>
    %30 = arith.subf %26, %29 : vector<16x128xf32>
    %31 = math.exp %30 : vector<16x128xf32>
    %cst_19 = arith.constant dense<0.000000e+00> : vector<16xf32>
    %32 = vector.multi_reduction <add>, %31, %cst_19 [1] : vector<16x128xf32> to vector<16xf32>
    %33 = vector.shape_cast %32 : vector<16xf32> to vector<16x1xf32>
    %34 = math.log %33 : vector<16x1xf32>
    %35 = vector.broadcast %34 : vector<16x1xf32> to vector<16x128xf32>
    %36 = arith.subf %30, %35 : vector<16x128xf32>
    %c0_20 = arith.constant 0 : index
    %c0_21 = arith.constant 0 : index
    %37 = vector.load %arg8[%c0_20, %c0_21] : memref<16x128xf32, #tpu.memory_space<vmem>>, vector<16x128xf32>
    tpu.vector_store %arg8[%c0_20, %c0_21], %36 {strides = array<i32>} : memref<16x128xf32, #tpu.memory_space<vmem>>, vector<16x128xf32>,
    return
  }
  func.func @transform_0(%arg0: i32) -> (i32, i32) {
    %c0_i32 = arith.constant 0 : i32
    %c0_i32_0 = arith.constant 0 : i32
    return %arg0, %c0_i32 : i32, i32
  }
  func.func @transform_1(%arg0: i32) -> (i32, i32) {
    %c0_i32 = arith.constant 0 : i32
    %c0_i32_0 = arith.constant 0 : i32
    %c0_i32_1 = arith.constant 0 : i32
    return %c0_i32, %c0_i32_0 : i32, i32
  }
  func.func @transform_2(%arg0: i32) -> (i32, i32) {
    %c0_i32 = arith.constant 0 : i32
    %c0_i32_0 = arith.constant 0 : i32
    %c0_i32_1 = arith.constant 0 : i32
    return %c0_i32, %c0_i32_0 : i32, i32
  }
  func.func @transform_3(%arg0: i32) -> (i32, i32) {
    %c0_i32 = arith.constant 0 : i32
    %c0_i32_0 = arith.constant 0 : i32
    %c0_i32_1 = arith.constant 0 : i32
    return %c0_i32, %c0_i32_0 : i32, i32
  }
  func.func @transform_4(%arg0: i32) -> (i32, i32) {
    %c0_i32 = arith.constant 0 : i32
    %c0_i32_0 = arith.constant 0 : i32
    %c0_i32_1 = arith.constant 0 : i32
    return %c0_i32, %c0_i32_0 : i32, i32
  }
  func.func @transform_5(%arg0: i32) -> (i32, i32) {
    %c0_i32 = arith.constant 0 : i32
    %c0_i32_0 = arith.constant 0 : i32
    %c0_i32_1 = arith.constant 0 : i32
    return %c0_i32, %c0_i32_0 : i32, i32
  }
  func.func @transform_6(%arg0: i32) -> (i32, i32) {
    %c0_i32 = arith.constant 0 : i32
    %c0_i32_0 = arith.constant 0 : i32
    %c0_i32_1 = arith.constant 0 : i32
    return %c0_i32, %c0_i32_0 : i32, i32
  }
  func.func @transform_7(%arg0: i32) -> (i32, i32) {
    %c0_i32 = arith.constant 0 : i32
    %c0_i32_0 = arith.constant 0 : i32
    return %arg0, %c0_i32 : i32, i32
  }
}

</mosaic_0001>

<bundles_post_ra>
// kernel: tpu_custom_call.1
= control target key start
LH: loop header
LB: loop body
LE: loop exit
PB: predicated region body
PF: predicated region fallthrough
CT: control target
= control target key end

     0   :  { %12 = vsyncpa [#allocation3], 0  ;;  %s863_s0 = inlined_call_operand.hbm [shape: bf16[16,128], index: 0, kind: input, shape index: {}]   ;;  %s864_s1 = inlined_call_operand.hbm [shape: bf16[128,128], index: 1, kind: input, shape index: {}]   ;;  %s865_s2 = inlined_call_operand.vmem [shape: f32[1,128], index: 2, kind: input, shape index: {}]   ;;  %s866_s3 = inlined_call_operand.hbm [shape: bf16[128,128], index: 3, kind: input, shape index: {}]   ;;  %s867_s4 = inlined_call_operand.vmem [shape: f32[1,128], index: 4, kind: input, shape index: {}]   ;;  %s868_s5 = inlined_call_operand.hbm [shape: bf16[128,128], index: 5, kind: input, shape index: {}]   ;;  %s869_s6 = inlined_call_operand.vmem [shape: f32[1,128], index: 6, kind: input, shape index: {}]   ;;  %s870_s7 = inlined_call_operand.hbm [shape: f32[16,128], index: 7, kind: output, shape index: {}]  }
   0x1   :  { %13 = vsyncpa [#allocation6], 0 }
   0x2   :  { %14 = vsyncpa [#allocation9], 0 }
   0x3   :  { %15 = vsyncpa [#allocation4], 0  ;;  %s746_s24 = smov [#allocation5]   ;;  %s747_s26 = smov [#allocation2]  }
   0x4   :  { %s33_s25 = sshll.u32 %s746_s24, 4  ;;  %s21_s27 = sshll.u32 %s747_s26, 4  ;;  %s34_s25 = int_to_ptr.vmem [resolvable:$true] %s33_s25  ;;  %s22_s27 = int_to_ptr.vmem [resolvable:$true] %s21_s27 }
   0x5   :  { %s646_s28 = scalar_lea.vmem %s34_s25, 1024  ;;  %p651_p1 = scmp.lt.s32.totalorder %s34_s25, %s34_s25 }
   0x6   :  { %p647_p0 = scmp.ne.s32.totalorder %s34_s25, %s646_s28  ;;  %p652_p2 = scmp.lt.s32.totalorder %s646_s28, %s646_s28 }
   0x8   :  { %p653_p3 = por %p652_p2, %p651_p1 }
   0xa   :  { %p654_p4 = pnand %p653_p3, %p647_p0 }
   0xc   :  { %657 = shalt.err (!%p654_p4)
}
   0xd   :  { %s748_s29 = smov 64   ;;  %s749_s30 = smov 4  }
   0xe   :  { %39 = dma.hbm_to_vmem [thread:$0]  %s864_s1, 1024, %s34_s25, [#allocation6], %s748_s29, %s748_s29, %s749_s30  }
   0xf   :  { %s666_s10 = scalar_lea.vmem %s22_s27, 128  ;;  %p671_p6 = scmp.lt.s32.totalorder %s22_s27, %s22_s27 }
  0x10   :  { %p667_p5 = scmp.ne.s32.totalorder %s22_s27, %s666_s10  ;;  %p672_p7 = scmp.lt.s32.totalorder %s666_s10, %s666_s10 }
  0x12   :  { %p673_p8 = por %p672_p7, %p671_p6 }
  0x14   :  { %p674_p9 = pnand %p673_p8, %p667_p5 }
  0x16   :  { %677 = shalt.err (!%p674_p9)
}
  0x17   :  { %27 = dma.hbm_to_vmem [thread:$0]  %s863_s0, 128, %s22_s27, [#allocation3], %s748_s29, %s748_s29, %s749_s30  }
  0x18   :  { %s750_s13 = smov [#allocation7]   ;;  %s751_s15 = smov [#allocation8]  }
  0x19   :  { %s47_s14 = sshll.u32 %s750_s13, 4  ;;  %s61_s16 = sshll.u32 %s751_s15, 4  ;;  %s48_s14 = int_to_ptr.vmem [resolvable:$true] %s47_s14  ;;  %s62_s16 = int_to_ptr.vmem [resolvable:$true] %s61_s16 }
  0x1a   :  { %s686_s1 = scalar_lea.vmem %s48_s14, 1024  ;;  %p691_p11 = scmp.lt.s32.totalorder %s48_s14, %s48_s14 }
  0x1b   :  { %p687_p10 = scmp.ne.s32.totalorder %s48_s14, %s686_s1  ;;  %p692_p12 = scmp.lt.s32.totalorder %s686_s1, %s686_s1 }
  0x1d   :  { %p693_p13 = por %p692_p12, %p691_p11 }
  0x1f   :  { %p694_p0 = pnand %p693_p13, %p687_p10 }
  0x21   :  { %697 = shalt.err (!%p694_p0)
}
  0x22   :  { %53 = dma.hbm_to_vmem [thread:$0]  %s866_s3, 1024, %s48_s14, [#allocation6], %s748_s29, %s748_s29, %s749_s30  }
  0x23   :  { %s706_s0 = scalar_lea.vmem %s62_s16, 1024  ;;  %p711_p2 = scmp.lt.s32.totalorder %s62_s16, %s62_s16 }
  0x24   :  { %p707_p1 = scmp.ne.s32.totalorder %s62_s16, %s706_s0  ;;  %p712_p3 = scmp.lt.s32.totalorder %s706_s0, %s706_s0 }
  0x26   :  { %p713_p4 = por %p712_p3, %p711_p2 }
  0x28   :  { %p714_p5 = pnand %p713_p4, %p707_p1 }
  0x2a   :  { %717 = shalt.err (!%p714_p5)
}
  0x2b   :  { %67 = dma.hbm_to_vmem [thread:$0]  %s868_s5, 1024, %s62_s16, [#allocation9], %s748_s29, %s748_s29, %s749_s30  }
  0x2c   :  { %738 = dma.done.wait [#allocation3], 128  }
  0x2d   :  { %739 = vsyncadd [#allocation3], 4294967168 }
  0x2e   :  { %740 = dma.done.wait [#allocation6], 2048  }
  0x2f   :  { %741 = vsyncadd [#allocation6], 4294965248 }
  0x30   :  { %742 = dma.done.wait [#allocation9], 1024  }
  0x31   :  { %743 = vsyncadd [#allocation9], 4294966272  ;;  %v752_v0 = vmov 0.0   ;;  %vm753_vm0 = vmmov 0   ;;  %v605_v1 = vld [vmem:[#allocation5 + $0x38] sm:$0xff]   ;;  %v606_v2 = vld [vmem:[#allocation5 + $0x30] sm:$0xff]   ;;  %v433_v46 = vlaneseq }
  0x32   :  { %534 = vmatprep.subr.bf16.mxu0 %v752_v0  ;;  %550 = vmatprep.mubr.msk.bf16.mxu0 %vm753_vm0, %v752_v0  ;;  %v607_v3 = vld [vmem:[#allocation5 + $0x28] sm:$0xff]   ;;  %v614_v4 = vld [vmem:[#allocation7 + $0x38] sm:$0xff]   ;;  %v608_v5 = vld [vmem:[#allocation5 + $0x20] sm:$0xff]  }
  0x33   :  { %554 = vmatprep.subr.bf16.mxu1 %v752_v0  ;;  %570 = vmatprep.mubr.msk.bf16.mxu1 %vm753_vm0, %v752_v0  ;;  %v615_v6 = vld [vmem:[#allocation7 + $0x30] sm:$0xff]   ;;  %v609_v7 = vld [vmem:[#allocation5 + $0x18] sm:$0xff]   ;;  %v616_v8 = vld [vmem:[#allocation7 + $0x28] sm:$0xff]   ;;  %v434_v47 = vand.u32 127, %v433_v46 }
  0x34   :  { %535 = vmatpush3.bf16.msra.mxu0 %v605_v1  ;;  %555 = vmatpush3.bf16.msra.mxu1 %v614_v4  ;;  %v610_v9 = vld [vmem:[#allocation5 + $0x10] sm:$0xff]   ;;  %v617_v10 = vld [vmem:[#allocation7 + $0x20] sm:$0xff]   ;;  %v611_v11 = vld [vmem:[#allocation5 + $0x8] sm:$0xff]  }
  0x35   :  { %536 = vmatprep.subr.bf16.mxu0 %v752_v0  ;;  %556 = vmatprep.subr.bf16.mxu1 %v752_v0  ;;  %v618_v12 = vld [vmem:[#allocation7 + $0x18] sm:$0xff]   ;;  %v612_v13 = vld [vmem:[#allocation5] sm:$0xff]   ;;  %v619_v15 = vld [vmem:[#allocation7 + $0x10] sm:$0xff]   ;;  %vm435_vm1 = vcmp.lt.s32.totalorder %v434_v47, 8 }
  0x36   :  { %v613_v14 = vld [vmem:[#allocation2] sm:$0xff]   ;;  %v620_v16 = vld [vmem:[#allocation7 + $0x8] sm:$0xff]   ;;  %v621_v17 = vld [vmem:[#allocation7] sm:$0xff]  }
  0x37   :  { %v622_v18 = vld [vmem:[#allocation8 + $0x38] sm:$0xff]   ;;  %v623_v19 = vld [vmem:[#allocation8 + $0x30] sm:$0xff]   ;;  %v624_v20 = vld [vmem:[#allocation8 + $0x28] sm:$0xff]  }
  0x38   :  { %537 = vmatpush3.bf16.msra.mxu0 %v606_v2  ;;  %557 = vmatpush3.bf16.msra.mxu1 %v615_v6  ;;  %v625_v21 = vld [vmem:[#allocation8 + $0x20] sm:$0xff]   ;;  %v626_v22 = vld [vmem:[#allocation8 + $0x18] sm:$0xff]   ;;  %v627_v33 = vld [vmem:[#allocation8 + $0x10] sm:$0xff]  }
  0x39   :  { %538 = vmatprep.subr.bf16.mxu0 %v752_v0  ;;  %558 = vmatprep.subr.bf16.mxu1 %v752_v0  ;;  %v479_v23 = vld [vmem:[%s865_s2] ss:$0 sm:$0xff]  ;;  %v628_v34 = vld [vmem:[#allocation8 + $0x8] sm:$0xff]   ;;  %v629_v35 = vld [vmem:[#allocation8] sm:$0xff]  }
  0x3a   :  { %v489_v36 = vld [vmem:[%s867_s4] ss:$0 sm:$0xff]  ;;  %s754_s4 = smov [#allocation10]  }
  0x3b   :  { %v498_v48 = vld [vmem:[%s869_s6] ss:$0 sm:$0xff]  ;;  %s465_s6 = sshll.u32 %s754_s4, 4  ;;  %s466_s6 = int_to_ptr.vmem [resolvable:$true] %s465_s6 }
  0x3c   :  { %539 = vmatpush3.bf16.msra.mxu0 %v607_v3  ;;  %559 = vmatpush3.bf16.msra.mxu1 %v616_v8  ;;  %s718_s24 = scalar_lea.vmem %s466_s6, 256  ;;  %p723_p7 = scmp.lt.s32.totalorder %s466_s6, %s466_s6 }
  0x3d   :  { %540 = vmatprep.subr.bf16.mxu0 %v752_v0  ;;  %560 = vmatprep.subr.bf16.mxu1 %v752_v0  ;;  %p719_p6 = scmp.ne.s32.totalorder %s466_s6, %s718_s24  ;;  %p724_p8 = scmp.lt.s32.totalorder %s718_s24, %s718_s24 }
  0x3f   :  { %p725_p9 = por %p724_p8, %p723_p7 }
  0x40   :  { %541 = vmatpush3.bf16.msra.mxu0 %v608_v5  ;;  %561 = vmatpush3.bf16.msra.mxu1 %v617_v10 }
  0x41   :  { %542 = vmatprep.subr.bf16.mxu0 %v752_v0  ;;  %562 = vmatprep.subr.bf16.mxu1 %v752_v0  ;;  %p726_p10 = pnand %p725_p9, %p719_p6 }
  0x44   :  { %543 = vmatpush3.bf16.msra.mxu0 %v609_v7  ;;  %563 = vmatpush3.bf16.msra.mxu1 %v618_v12 }
  0x45   :  { %544 = vmatprep.subr.bf16.mxu0 %v752_v0  ;;  %564 = vmatprep.subr.bf16.mxu1 %v752_v0 }
  0x48   :  { %545 = vmatpush3.bf16.msra.mxu0 %v610_v9  ;;  %565 = vmatpush3.bf16.msra.mxu1 %v619_v15 }
  0x49   :  { %546 = vmatprep.subr.bf16.mxu0 %v752_v0  ;;  %566 = vmatprep.subr.bf16.mxu1 %v752_v0 }
  0x4c   :  { %547 = vmatpush3.bf16.msra.mxu0 %v611_v11  ;;  %567 = vmatpush3.bf16.msra.mxu1 %v620_v16 }
  0x4d   :  { %548 = vmatprep.subr.bf16.mxu0 %v752_v0  ;;  %568 = vmatprep.subr.bf16.mxu1 %v752_v0 }
  0x50   :  { %549 = vmatpush3.bf16.msra.mxu0 %v612_v13  ;;  %569 = vmatpush3.bf16.msra.mxu1 %v621_v17 }
  0x51   :  { %574 = vmatprep.subr.bf16.mxu0 %v752_v0 }
  0x53   :  { %551 = vmatmul.mubr.bf16.vlgmr.msra.gmra.mxu0 %v613_v14 }
  0x54   :  { %590 = vmatprep.mubr.msk.bf16.mxu0 %vm753_vm0, %v752_v0  ;;  %575 = vmatpush3.bf16.msra.mxu0 %v622_v18 }
  0x55   :  { %576 = vmatprep.subr.bf16.mxu0 %v752_v0 }
  0x58   :  { %577 = vmatpush3.bf16.msra.mxu0 %v623_v19 }
  0x59   :  { %578 = vmatprep.subr.bf16.mxu0 %v752_v0 }
  0x5c   :  { %579 = vmatpush3.bf16.msra.mxu0 %v624_v20 }
  0x5d   :  { %580 = vmatprep.subr.bf16.mxu0 %v752_v0 }
  0x60   :  { %581 = vmatpush3.bf16.msra.mxu0 %v625_v21 }
  0x61   :  { %582 = vmatprep.subr.bf16.mxu0 %v752_v0 }
  0x64   :  { %583 = vmatpush3.bf16.msra.mxu0 %v626_v22 }
  0x65   :  { %584 = vmatprep.subr.bf16.mxu0 %v752_v0 }
  0x68   :  { %585 = vmatpush3.bf16.msra.mxu0 %v627_v33 }
  0x69   :  { %586 = vmatprep.subr.bf16.mxu0 %v752_v0 }
  0x6c   :  { %587 = vmatpush3.bf16.msra.mxu0 %v628_v34 }
  0x6d   :  { %588 = vmatprep.subr.bf16.mxu0 %v752_v0 }
  0x70   :  { %589 = vmatpush3.bf16.msra.mxu0 %v629_v35 }
 0x113   :  { %v196_v24 = vpop.f32.mrf.mxu0 }
 0x114   :  { %v197_v26 = vadd.f32 %v479_v23, %v196_v24 }
 0x115   :  { %v552_v25 = vpop.f32.mrf.mxu0 }
 0x116   :  { %v203_v30 = vmax.f32 %v197_v26, 0.0 }
 0x117   :  { %v199_v27 = vpop.f32.mrf.mxu0 }
 0x118   :  { %v200_v28 = vadd.f32 %v479_v23, %v199_v27 }
 0x119   :  { %v553_v29 = vpop.f32.mrf.mxu0 }
 0x11a   :  { %v204_v31 = vmax.f32 %v200_v28, 0.0 }
 0x11c   :  { %v205_v32 = vpack.c.bf16 %v204_v31, %v203_v30 }
 0x11e   :  { %571 = vmatmul.mubr.bf16.vlgmr.msra.gmra.mxu1 %v205_v32 }
 0x1de   :  { %v311_v37 = vpop.f32.mrf.mxu1 }
 0x1df   :  { %v312_v39 = vadd.f32 %v489_v36, %v311_v37 }
 0x1e0   :  { %v572_v38 = vpop.f32.mrf.mxu1 }
 0x1e1   :  { %v318_v43 = vmax.f32 %v312_v39, 0.0 }
 0x1e2   :  { %v314_v40 = vpop.f32.mrf.mxu1 }
 0x1e3   :  { %v315_v41 = vadd.f32 %v489_v36, %v314_v40 }
 0x1e4   :  { %v573_v42 = vpop.f32.mrf.mxu1 }
 0x1e5   :  { %v319_v44 = vmax.f32 %v315_v41, 0.0 }
 0x1e7   :  { %v320_v45 = vpack.c.bf16 %v319_v44, %v318_v43 }
 0x1e9   :  { %591 = vmatmul.mubr.bf16.vlgmr.msra.gmra.mxu0 %v320_v45 }
 0x2a9   :  { %v426_v49 = vpop.f32.mrf.mxu0 }
 0x2aa   :  { %v427_v50 = vadd.f32 %v498_v48, %v426_v49 }
 0x2ab   :  { %v592_v51 = vpop.f32.mrf.mxu0 }
 0x2ac   :  { %v436_v52 = vsel %vm435_vm1, %v427_v50, -1e+30 }
 0x2ad   :  { %438 = vmax.xlane.f32.xlu0 %v436_v52  ;;  %v429_v53 = vpop.f32.mrf.mxu0 }
 0x2ae   :  { %v430_v54 = vadd.f32 %v498_v48, %v429_v53 }
 0x2af   :  { %v593_v55 = vpop.f32.mrf.mxu0 }
 0x2b0   :  { %v437_v56 = vsel %vm435_vm1, %v430_v54, -1e+30 }
 0x2b1   :  { %440 = vmax.xlane.f32.xlu0 %v437_v56 }
 0x336   :  { %v439_v57 = vpop.xlane.xlu0 %438 }
 0x337   :  { %v442_v58 = vsub.f32 %v436_v52, %v439_v57 }
 0x339   :  { %v444_v59 = vmul.f32 1.442695, %v442_v58 }
 0x33a   :  { %v441_v60 = vpop.xlane.xlu0 %440 }
 0x33b   :  { %v443_v61 = vsub.f32 %v437_v56, %v441_v60  ;;  %630 = vpow2.f32 %v444_v59 }
 0x33d   :  { %v446_v62 = vmul.f32 1.442695, %v443_v61 }
 0x33f   :  { %632 = vpow2.f32 %v446_v62 }
 0x348   :  { %v631_v63 = vpop.eup %630 }
 0x349   :  { %448 = vadd.xlane.f32.xlu1 %v631_v63 }
 0x34c   :  { %v633_v0 = vpop.eup %632 }
 0x34d   :  { %450 = vadd.xlane.f32.xlu1 %v633_v0 }
 0x3d2   :  { %v449_v1 = vpop.xlane.xlu1 %448 }
 0x3d3   :  { %634 = vlog2.f32 %v449_v1 }
 0x3d6   :  { %v451_v2 = vpop.xlane.xlu1 %450 }
 0x3d7   :  { %636 = vlog2.f32 %v451_v2 }
 0x3e0   :  { %v635_v3 = vpop.eup %634 }
 0x3e1   :  { %v453_v4 = vmul.f32 0.6931472, %v635_v3 }
 0x3e3   :  { %v456_v5 = vsub.f32 %v442_v58, %v453_v4 }
 0x3e4   :  { %v637_v6 = vpop.eup %636 }
 0x3e5   :  { %458 = vst [vmem:[#allocation10] sm:$0xff] %v456_v5  ;;  %v455_v7 = vmul.f32 0.6931472, %v637_v6 }
 0x3e7   :  { %v457_v8 = vsub.f32 %v443_v61, %v455_v7 }
 0x3e9   :  { %459 = vst [vmem:[#allocation10 + $0x8] sm:$0xff] %v457_v8 }
 0x3ea   :  { %729 = shalt.err (!%p726_p10)
}
 0x3eb   :  { %s755_s25 = smov 128   ;;  %s756_s26 = smov 8  }
 0x3ec   :  { %471 = dma.vmem_to_hbm [thread:$0]  %s466_s6, 256, %s870_s7, [#allocation4], %s755_s25, %s755_s25, %s756_s26  }
 0x3ed   :  { %744 = dma.done.wait [#allocation4], 256  }
 0x3ee   :  { %745 = vsyncadd [#allocation4], 4294967040 }
 0x3ef   :  { %475 = vsyncpa [#allocation3], 1 }
 0x3f0   :  { %476 = vsyncpa [#allocation6], 1 }
 0x3f1   :  { %477 = vsyncpa [#allocation9], 1 }
 0x3f2   :  { %478 = vsyncpa [#allocation4], 1 }

// kernel: tpu_custom_call.1
= control target key start
LH: loop header
LB: loop body
LE: loop exit
PB: predicated region body
PF: predicated region fallthrough
CT: control target
= control target key end

     0   :  { %12 = vsyncpa [#allocation3], 0  ;;  %s863_s0 = inlined_call_operand.hbm [shape: bf16[16,128], index: 0, kind: input, shape index: {}]   ;;  %s864_s1 = inlined_call_operand.hbm [shape: bf16[128,128], index: 1, kind: input, shape index: {}]   ;;  %s865_s2 = inlined_call_operand.vmem [shape: f32[1,128], index: 2, kind: input, shape index: {}]   ;;  %s866_s3 = inlined_call_operand.hbm [shape: bf16[128,128], index: 3, kind: input, shape index: {}]   ;;  %s867_s4 = inlined_call_operand.vmem [shape: f32[1,128], index: 4, kind: input, shape index: {}]   ;;  %s868_s5 = inlined_call_operand.hbm [shape: bf16[128,128], index: 5, kind: input, shape index: {}]   ;;  %s869_s6 = inlined_call_operand.vmem [shape: f32[1,128], index: 6, kind: input, shape index: {}]   ;;  %s870_s7 = inlined_call_operand.hbm [shape: f32[16,128], index: 7, kind: output, shape index: {}]  }
   0x1   :  { %13 = vsyncpa [#allocation6], 0 }
   0x2   :  { %14 = vsyncpa [#allocation9], 0 }
   0x3   :  { %15 = vsyncpa [#allocation4], 0  ;;  %s746_s24 = smov [#allocation5]   ;;  %s747_s26 = smov [#allocation2]  }
   0x4   :  { %s33_s25 = sshll.u32 %s746_s24, 4  ;;  %s21_s27 = sshll.u32 %s747_s26, 4  ;;  %s34_s25 = int_to_ptr.vmem [resolvable:$true] %s33_s25  ;;  %s22_s27 = int_to_ptr.vmem [resolvable:$true] %s21_s27 }
   0x5   :  { %s646_s28 = scalar_lea.vmem %s34_s25, 1024  ;;  %p651_p1 = scmp.lt.s32.totalorder %s34_s25, %s34_s25 }
   0x6   :  { %p647_p0 = scmp.ne.s32.totalorder %s34_s25, %s646_s28  ;;  %p652_p2 = scmp.lt.s32.totalorder %s646_s28, %s646_s28 }
   0x8   :  { %p653_p3 = por %p652_p2, %p651_p1 }
   0xa   :  { %p654_p4 = pnand %p653_p3, %p647_p0 }
   0xc   :  { %657 = shalt.err (!%p654_p4)
}
   0xd   :  { %s748_s29 = smov 64   ;;  %s749_s30 = smov 4  }
   0xe   :  { %39 = dma.hbm_to_vmem [thread:$0]  %s864_s1, 1024, %s34_s25, [#allocation6], %s748_s29, %s748_s29, %s749_s30  }
   0xf   :  { %s666_s10 = scalar_lea.vmem %s22_s27, 128  ;;  %p671_p6 = scmp.lt.s32.totalorder %s22_s27, %s22_s27 }
  0x10   :  { %p667_p5 = scmp.ne.s32.totalorder %s22_s27, %s666_s10  ;;  %p672_p7 = scmp.lt.s32.totalorder %s666_s10, %s666_s10 }
  0x12   :  { %p673_p8 = por %p672_p7, %p671_p6 }
  0x14   :  { %p674_p9 = pnand %p673_p8, %p667_p5 }
  0x16   :  { %677 = shalt.err (!%p674_p9)
}
  0x17   :  { %27 = dma.hbm_to_vmem [thread:$0]  %s863_s0, 128, %s22_s27, [#allocation3], %s748_s29, %s748_s29, %s749_s30  }
  0x18   :  { %s750_s13 = smov [#allocation7]   ;;  %s751_s15 = smov [#allocation8]  }
  0x19   :  { %s47_s14 = sshll.u32 %s750_s13, 4  ;;  %s61_s16 = sshll.u32 %s751_s15, 4  ;;  %s48_s14 = int_to_ptr.vmem [resolvable:$true] %s47_s14  ;;  %s62_s16 = int_to_ptr.vmem [resolvable:$true] %s61_s16 }
  0x1a   :  { %s686_s1 = scalar_lea.vmem %s48_s14, 1024  ;;  %p691_p11 = scmp.lt.s32.totalorder %s48_s14, %s48_s14 }
  0x1b   :  { %p687_p10 = scmp.ne.s32.totalorder %s48_s14, %s686_s1  ;;  %p692_p12 = scmp.lt.s32.totalorder %s686_s1, %s686_s1 }
  0x1d   :  { %p693_p13 = por %p692_p12, %p691_p11 }
  0x1f   :  { %p694_p0 = pnand %p693_p13, %p687_p10 }
  0x21   :  { %697 = shalt.err (!%p694_p0)
}
  0x22   :  { %53 = dma.hbm_to_vmem [thread:$0]  %s866_s3, 1024, %s48_s14, [#allocation6], %s748_s29, %s748_s29, %s749_s30  }
  0x23   :  { %s706_s0 = scalar_lea.vmem %s62_s16, 1024  ;;  %p711_p2 = scmp.lt.s32.totalorder %s62_s16, %s62_s16 }
  0x24   :  { %p707_p1 = scmp.ne.s32.totalorder %s62_s16, %s706_s0  ;;  %p712_p3 = scmp.lt.s32.totalorder %s706_s0, %s706_s0 }
  0x26   :  { %p713_p4 = por %p712_p3, %p711_p2 }
  0x28   :  { %p714_p5 = pnand %p713_p4, %p707_p1 }
  0x2a   :  { %717 = shalt.err (!%p714_p5)
}
  0x2b   :  { %67 = dma.hbm_to_vmem [thread:$0]  %s868_s5, 1024, %s62_s16, [#allocation9], %s748_s29, %s748_s29, %s749_s30  }
  0x2c   :  { %738 = dma.done.wait [#allocation3], 128  }
  0x2d   :  { %739 = vsyncadd [#allocation3], 4294967168 }
  0x2e   :  { %740 = dma.done.wait [#allocation6], 2048  }
  0x2f   :  { %741 = vsyncadd [#allocation6], 4294965248 }
  0x30   :  { %742 = dma.done.wait [#allocation9], 1024  }
  0x31   :  { %743 = vsyncadd [#allocation9], 4294966272  ;;  %v752_v0 = vmov 0.0   ;;  %vm753_vm0 = vmmov 0   ;;  %v605_v1 = vld [vmem:[#allocation5 + $0x38] sm:$0xff]   ;;  %v606_v2 = vld [vmem:[#allocation5 + $0x30] sm:$0xff]   ;;  %v433_v46 = vlaneseq }
  0x32   :  { %534 = vmatprep.subr.bf16.mxu0 %v752_v0  ;;  %550 = vmatprep.mubr.msk.bf16.mxu0 %vm753_vm0, %v752_v0  ;;  %v607_v3 = vld [vmem:[#allocation5 + $0x28] sm:$0xff]   ;;  %v614_v4 = vld [vmem:[#allocation7 + $0x38] sm:$0xff]   ;;  %v608_v5 = vld [vmem:[#allocation5 + $0x20] sm:$0xff]  }
  0x33   :  { %554 = vmatprep.subr.bf16.mxu1 %v752_v0  ;;  %570 = vmatprep.mubr.msk.bf16.mxu1 %vm753_vm0, %v752_v0  ;;  %v615_v6 = vld [vmem:[#allocation7 + $0x30] sm:$0xff]   ;;  %v609_v7 = vld [vmem:[#allocation5 + $0x18] sm:$0xff]   ;;  %v616_v8 = vld [vmem:[#allocation7 + $0x28] sm:$0xff]   ;;  %v434_v47 = vand.u32 127, %v433_v46 }
  0x34   :  { %535 = vmatpush3.bf16.msra.mxu0 %v605_v1  ;;  %555 = vmatpush3.bf16.msra.mxu1 %v614_v4  ;;  %v610_v9 = vld [vmem:[#allocation5 + $0x10] sm:$0xff]   ;;  %v617_v10 = vld [vmem:[#allocation7 + $0x20] sm:$0xff]   ;;  %v611_v11 = vld [vmem:[#allocation5 + $0x8] sm:$0xff]  }
  0x35   :  { %536 = vmatprep.subr.bf16.mxu0 %v752_v0  ;;  %556 = vmatprep.subr.bf16.mxu1 %v752_v0  ;;  %v618_v12 = vld [vmem:[#allocation7 + $0x18] sm:$0xff]   ;;  %v612_v13 = vld [vmem:[#allocation5] sm:$0xff]   ;;  %v619_v15 = vld [vmem:[#allocation7 + $0x10] sm:$0xff]   ;;  %vm435_vm1 = vcmp.lt.s32.totalorder %v434_v47, 8 }
  0x36   :  { %v613_v14 = vld [vmem:[#allocation2] sm:$0xff]   ;;  %v620_v16 = vld [vmem:[#allocation7 + $0x8] sm:$0xff]   ;;  %v621_v17 = vld [vmem:[#allocation7] sm:$0xff]  }
  0x37   :  { %v622_v18 = vld [vmem:[#allocation8 + $0x38] sm:$0xff]   ;;  %v623_v19 = vld [vmem:[#allocation8 + $0x30] sm:$0xff]   ;;  %v624_v20 = vld [vmem:[#allocation8 + $0x28] sm:$0xff]  }
  0x38   :  { %537 = vmatpush3.bf16.msra.mxu0 %v606_v2  ;;  %557 = vmatpush3.bf16.msra.mxu1 %v615_v6  ;;  %v625_v21 = vld [vmem:[#allocation8 + $0x20] sm:$0xff]   ;;  %v626_v22 = vld [vmem:[#allocation8 + $0x18] sm:$0xff]   ;;  %v627_v33 = vld [vmem:[#allocation8 + $0x10] sm:$0xff]  }
  0x39   :  { %538 = vmatprep.subr.bf16.mxu0 %v752_v0  ;;  %558 = vmatprep.subr.bf16.mxu1 %v752_v0  ;;  %v479_v23 = vld [vmem:[%s865_s2] ss:$0 sm:$0xff]  ;;  %v628_v34 = vld [vmem:[#allocation8 + $0x8] sm:$0xff]   ;;  %v629_v35 = vld [vmem:[#allocation8] sm:$0xff]  }
  0x3a   :  { %v489_v36 = vld [vmem:[%s867_s4] ss:$0 sm:$0xff]  ;;  %s754_s4 = smov [#allocation10]  }
  0x3b   :  { %v498_v48 = vld [vmem:[%s869_s6] ss:$0 sm:$0xff]  ;;  %s465_s6 = sshll.u32 %s754_s4, 4  ;;  %s466_s6 = int_to_ptr.vmem [resolvable:$true] %s465_s6 }
  0x3c   :  { %539 = vmatpush3.bf16.msra.mxu0 %v607_v3  ;;  %559 = vmatpush3.bf16.msra.mxu1 %v616_v8  ;;  %s718_s24 = scalar_lea.vmem %s466_s6, 256  ;;  %p723_p7 = scmp.lt.s32.totalorder %s466_s6, %s466_s6 }
  0x3d   :  { %540 = vmatprep.subr.bf16.mxu0 %v752_v0  ;;  %560 = vmatprep.subr.bf16.mxu1 %v752_v0  ;;  %p719_p6 = scmp.ne.s32.totalorder %s466_s6, %s718_s24  ;;  %p724_p8 = scmp.lt.s32.totalorder %s718_s24, %s718_s24 }
  0x3f   :  { %p725_p9 = por %p724_p8, %p723_p7 }
  0x40   :  { %541 = vmatpush3.bf16.msra.mxu0 %v608_v5  ;;  %561 = vmatpush3.bf16.msra.mxu1 %v617_v10 }
  0x41   :  { %542 = vmatprep.subr.bf16.mxu0 %v752_v0  ;;  %562 = vmatprep.subr.bf16.mxu1 %v752_v0  ;;  %p726_p10 = pnand %p725_p9, %p719_p6 }
  0x44   :  { %543 = vmatpush3.bf16.msra.mxu0 %v609_v7  ;;  %563 = vmatpush3.bf16.msra.mxu1 %v618_v12 }
  0x45   :  { %544 = vmatprep.subr.bf16.mxu0 %v752_v0  ;;  %564 = vmatprep.subr.bf16.mxu1 %v752_v0 }
  0x48   :  { %545 = vmatpush3.bf16.msra.mxu0 %v610_v9  ;;  %565 = vmatpush3.bf16.msra.mxu1 %v619_v15 }
  0x49   :  { %546 = vmatprep.subr.bf16.mxu0 %v752_v0  ;;  %566 = vmatprep.subr.bf16.mxu1 %v752_v0 }
  0x4c   :  { %547 = vmatpush3.bf16.msra.mxu0 %v611_v11  ;;  %567 = vmatpush3.bf16.msra.mxu1 %v620_v16 }
  0x4d   :  { %548 = vmatprep.subr.bf16.mxu0 %v752_v0  ;;  %568 = vmatprep.subr.bf16.mxu1 %v752_v0 }
  0x50   :  { %549 = vmatpush3.bf16.msra.mxu0 %v612_v13  ;;  %569 = vmatpush3.bf16.msra.mxu1 %v621_v17 }
  0x51   :  { %574 = vmatprep.subr.bf16.mxu0 %v752_v0 }
  0x53   :  { %551 = vmatmul.mubr.bf16.vlgmr.msra.gmra.mxu0 %v613_v14 }
  0x54   :  { %590 = vmatprep.mubr.msk.bf16.mxu0 %vm753_vm0, %v752_v0  ;;  %575 = vmatpush3.bf16.msra.mxu0 %v622_v18 }
  0x55   :  { %576 = vmatprep.subr.bf16.mxu0 %v752_v0 }
  0x58   :  { %577 = vmatpush3.bf16.msra.mxu0 %v623_v19 }
  0x59   :  { %578 = vmatprep.subr.bf16.mxu0 %v752_v0 }
  0x5c   :  { %579 = vmatpush3.bf16.msra.mxu0 %v624_v20 }
  0x5d   :  { %580 = vmatprep.subr.bf16.mxu0 %v752_v0 }
  0x60   :  { %581 = vmatpush3.bf16.msra.mxu0 %v625_v21 }
  0x61   :  { %582 = vmatprep.subr.bf16.mxu0 %v752_v0 }
  0x64   :  { %583 = vmatpush3.bf16.msra.mxu0 %v626_v22 }
  0x65   :  { %584 = vmatprep.subr.bf16.mxu0 %v752_v0 }
  0x68   :  { %585 = vmatpush3.bf16.msra.mxu0 %v627_v33 }
  0x69   :  { %586 = vmatprep.subr.bf16.mxu0 %v752_v0 }
  0x6c   :  { %587 = vmatpush3.bf16.msra.mxu0 %v628_v34 }
  0x6d   :  { %588 = vmatprep.subr.bf16.mxu0 %v752_v0 }
  0x70   :  { %589 = vmatpush3.bf16.msra.mxu0 %v629_v35 }
 0x113   :  { %v196_v24 = vpop.f32.mrf.mxu0 }
 0x114   :  { %v197_v26 = vadd.f32 %v479_v23, %v196_v24 }
 0x115   :  { %v552_v25 = vpop.f32.mrf.mxu0 }
 0x116   :  { %v203_v30 = vmax.f32 %v197_v26, 0.0 }
 0x117   :  { %v199_v27 = vpop.f32.mrf.mxu0 }
 0x118   :  { %v200_v28 = vadd.f32 %v479_v23, %v199_v27 }
 0x119   :  { %v553_v29 = vpop.f32.mrf.mxu0 }
 0x11a   :  { %v204_v31 = vmax.f32 %v200_v28, 0.0 }
 0x11c   :  { %v205_v32 = vpack.c.bf16 %v204_v31, %v203_v30 }
 0x11e   :  { %571 = vmatmul.mubr.bf16.vlgmr.msra.gmra.mxu1 %v205_v32 }
 0x1de   :  { %v311_v37 = vpop.f32.mrf.mxu1 }
 0x1df   :  { %v312_v39 = vadd.f32 %v489_v36, %v311_v37 }
 0x1e0   :  { %v572_v38 = vpop.f32.mrf.mxu1 }
 0x1e1   :  { %v318_v43 = vmax.f32 %v312_v39, 0.0 }
 0x1e2   :  { %v314_v40 = vpop.f32.mrf.mxu1 }
 0x1e3   :  { %v315_v41 = vadd.f32 %v489_v36, %v314_v40 }
 0x1e4   :  { %v573_v42 = vpop.f32.mrf.mxu1 }
 0x1e5   :  { %v319_v44 = vmax.f32 %v315_v41, 0.0 }
 0x1e7   :  { %v320_v45 = vpack.c.bf16 %v319_v44, %v318_v43 }
 0x1e9   :  { %591 = vmatmul.mubr.bf16.vlgmr.msra.gmra.mxu0 %v320_v45 }
 0x2a9   :  { %v426_v49 = vpop.f32.mrf.mxu0 }
 0x2aa   :  { %v427_v50 = vadd.f32 %v498_v48, %v426_v49 }
 0x2ab   :  { %v592_v51 = vpop.f32.mrf.mxu0 }
 0x2ac   :  { %v436_v52 = vsel %vm435_vm1, %v427_v50, -1e+30 }
 0x2ad   :  { %438 = vmax.xlane.f32.xlu0 %v436_v52  ;;  %v429_v53 = vpop.f32.mrf.mxu0 }
 0x2ae   :  { %v430_v54 = vadd.f32 %v498_v48, %v429_v53 }
 0x2af   :  { %v593_v55 = vpop.f32.mrf.mxu0 }
 0x2b0   :  { %v437_v56 = vsel %vm435_vm1, %v430_v54, -1e+30 }
 0x2b1   :  { %440 = vmax.xlane.f32.xlu0 %v437_v56 }
 0x336   :  { %v439_v57 = vpop.xlane.xlu0 %438 }
 0x337   :  { %v442_v58 = vsub.f32 %v436_v52, %v439_v57 }
 0x339   :  { %v444_v59 = vmul.f32 1.442695, %v442_v58 }
 0x33a   :  { %v441_v60 = vpop.xlane.xlu0 %440 }
 0x33b   :  { %v443_v61 = vsub.f32 %v437_v56, %v441_v60  ;;  %630 = vpow2.f32 %v444_v59 }
 0x33d   :  { %v446_v62 = vmul.f32 1.442695, %v443_v61 }
 0x33f   :  { %632 = vpow2.f32 %v446_v62 }
 0x348   :  { %v631_v63 = vpop.eup %630 }
 0x349   :  { %448 = vadd.xlane.f32.xlu1 %v631_v63 }
 0x34c   :  { %v633_v0 = vpop.eup %632 }
 0x34d   :  { %450 = vadd.xlane.f32.xlu1 %v633_v0 }
 0x3d2   :  { %v449_v1 = vpop.xlane.xlu1 %448 }
 0x3d3   :  { %634 = vlog2.f32 %v449_v1 }
 0x3d6   :  { %v451_v2 = vpop.xlane.xlu1 %450 }
 0x3d7   :  { %636 = vlog2.f32 %v451_v2 }
 0x3e0   :  { %v635_v3 = vpop.eup %634 }
 0x3e1   :  { %v453_v4 = vmul.f32 0.6931472, %v635_v3 }
 0x3e3   :  { %v456_v5 = vsub.f32 %v442_v58, %v453_v4 }
 0x3e4   :  { %v637_v6 = vpop.eup %636 }
 0x3e5   :  { %458 = vst [vmem:[#allocation10] sm:$0xff] %v456_v5  ;;  %v455_v7 = vmul.f32 0.6931472, %v637_v6 }
 0x3e7   :  { %v457_v8 = vsub.f32 %v443_v61, %v455_v7 }
 0x3e9   :  { %459 = vst [vmem:[#allocation10 + $0x8] sm:$0xff] %v457_v8 }
 0x3ea   :  { %729 = shalt.err (!%p726_p10)
}
 0x3eb   :  { %s755_s25 = smov 128   ;;  %s756_s26 = smov 8  }
 0x3ec   :  { %471 = dma.vmem_to_hbm [thread:$0]  %s466_s6, 256, %s870_s7, [#allocation4], %s755_s25, %s755_s25, %s756_s26  }
 0x3ed   :  { %744 = dma.done.wait [#allocation4], 256  }
 0x3ee   :  { %745 = vsyncadd [#allocation4], 4294967040 }
 0x3ef   :  { %475 = vsyncpa [#allocation3], 1 }
 0x3f0   :  { %476 = vsyncpa [#allocation6], 1 }
 0x3f1   :  { %477 = vsyncpa [#allocation9], 1 }
 0x3f2   :  { %478 = vsyncpa [#allocation4], 1 }

</bundles_post_ra>
